<compile_context>
chip_gen: v7x
topology: tpu7x:2x2x1
jax: 0.10.0
libtpu: 0.0.40
codegen_flags: <defaults>
</compile_context>

<pallas_src>
import math
from functools import partial

import jax
import jax.numpy as jnp
from jax import lax
from jax.experimental import pallas as pl
from jax.experimental.pallas import tpu as pltpu

_INV_SQRT2 = 1.0 / math.sqrt(2.0)
_LIKELIHOOD_BOUND = 1e-8


# ----------------------------------------------------------------------------
# Kernel body (shared by both layouts)
# ----------------------------------------------------------------------------
def _gaussian_kernel(x_ref, sigma_ref, mu_ref, out_ref):
    """clamp(Phi((x-mu+.5)/sigma) - Phi((x-mu-.5)/sigma), 1e-8).

    sigma_ref / mu_ref may be (tile_rows, 1) columns (row-broadcast layout) or
    full (tile_rows, L) tiles; jnp broadcasting handles both.  All math is f32
    in-kernel regardless of the HBM storage dtype.
    """
    x = x_ref[...].astype(jnp.float32)
    sigma = sigma_ref[...].astype(jnp.float32)
    mu = mu_ref[...].astype(jnp.float32)

    # 1/sigma with the CDF's 1/sqrt(2) folded in -> one fewer multiply/elem.
    # (Computed on sigma's native block shape: for the row-broadcast layout
    #  this is a (tile_rows, 1) column, so the divide is nearly free.)
    k = pl.reciprocal(sigma, approx=False) * _INV_SQRT2
    centered = x - mu
    upper = (centered + 0.5) * k
    lower = (centered - 0.5) * k
    res = 0.5 * (lax.erf(upper) - lax.erf(lower))
    out_ref[...] = jnp.maximum(res, _LIKELIHOOD_BOUND).astype(out_ref.dtype)


# ----------------------------------------------------------------------------
# Helpers
# ----------------------------------------------------------------------------
def _round_up(a, b):
    return -(-a // b) * b


def _norm_shape(shape, ndim):
    return (1,) * (ndim - len(shape)) + tuple(shape)


def _trailing_ones(shape, ndim):
    s = _norm_shape(shape, ndim)
    t = 0
    for d in reversed(s):
        if d != 1:
            break
        t += 1
    return t


def _pick_tile_rows(rows, cols, elem_bytes=4, tile_bytes=2 * 1024 * 1024):
    """Pick a row-tile size; prefer divisors of `rows` so no padding is needed."""
    target = max(8, (tile_bytes // (cols * elem_bytes)) // 8 * 8)
    if rows <= target:
        return rows, rows                       # single full-extent block
    if rows % 8 == 0:
        r8 = rows // 8
        for d in range(target // 8, 0, -1):
            if r8 % d == 0:
                if d * 8 * 4 >= target:         # still a reasonably big tile
                    return d * 8, rows          # divides evenly -> no pad
                break
    return target, _round_up(rows, target)


def _compiler_params(grid_size):
    kind = ""
    try:
        kind = jax.devices()[0].device_kind.lower()
    except Exception:
        pass
    if "v7" in kind and grid_size > 1:
        # v7x has 2 TensorCores per chip; split the row grid across them.
        sem = (pltpu.CORE_PARALLEL,)
    else:
        sem = ("parallel",)
    return pltpu.CompilerParams(dimension_semantics=sem,
                                vmem_limit_bytes=32 * 1024 * 1024)


def _pallas_call(arrays, specs, out_shape2, out_dtype, grid):
    return pl.pallas_call(
        _gaussian_kernel,
        out_shape=jax.ShapeDtypeStruct(out_shape2, out_dtype),
        grid_spec=pltpu.PrefetchScalarGridSpec(
            num_scalar_prefetch=0,
            grid=grid,
            in_specs=list(specs[:-1]),
            out_specs=specs[-1],
        ),
        compiler_params=_compiler_params(grid[0]),
    )(*arrays)


# ----------------------------------------------------------------------------
# Path A: generic flat lane-dense slab
# ----------------------------------------------------------------------------
def _forward_flat(inputs, sigma, mu, out_shape, out_dtype, total, tile_bytes):
    # Pick a lane width that divides the element count when possible so no
    # host-side pad / output slice (extra HBM copies) is needed.
    lane = 512
    for cand in (512, 256, 128):
        if total % cand == 0:
            lane = cand
            break
    rows = -(-total // lane)
    tile_rows, rows_pad = _pick_tile_rows(rows, lane, 4, tile_bytes)
    padded = rows_pad * lane

    def prep(a, pad_value):
        if a.shape != out_shape:
            a = jnp.broadcast_to(a, out_shape)   # per-element path: usually a no-op
        a = a.reshape(-1)
        if padded != total:
            a = jnp.pad(a, (0, padded - total), constant_values=pad_value)
        return a.reshape(rows_pad, lane)

    x2 = prep(inputs, 0.0)
    sg2 = prep(sigma, 1.0)   # sigma tail padded with 1.0 -> discarded tile stays finite
    mu2 = prep(mu, 0.0)

    spec = pl.BlockSpec((tile_rows, lane), lambda i: (i, 0))
    grid = (rows_pad // tile_rows,)
    out2 = _pallas_call((x2, sg2, mu2), (spec, spec, spec, spec),
                        (rows_pad, lane), out_dtype, grid)

    out_flat = out2.reshape(-1)
    if padded != total:
        out_flat = out_flat[:total]
    return out_flat.reshape(out_shape)


# ----------------------------------------------------------------------------
# Path B: sigma/mu constant over a trailing slab (e.g. per-channel (1,C,1,1))
# ----------------------------------------------------------------------------
def _forward_row_broadcast(inputs, sigma, mu, out_shape, out_dtype, s,
                           rows, l_col, l_pad, tile_bytes):
    ndim = len(out_shape)
    row_shape = out_shape[:ndim - s]
    tile_rows, rows_pad = _pick_tile_rows(rows, l_pad, 4, tile_bytes)

    def prep_big(a, pad_value):
        if a.shape != out_shape:
            a = jnp.broadcast_to(a, out_shape)
        a = a.reshape(rows, l_col)
        if rows_pad != rows or l_pad != l_col:
            a = jnp.pad(a, ((0, rows_pad - rows), (0, l_pad - l_col)),
                        constant_values=pad_value)
        return a, pl.BlockSpec((tile_rows, l_pad), lambda i: (i, 0))

    def prep_param(a, pad_value):
        if _trailing_ones(a.shape, ndim) < s:
            return prep_big(a, pad_value)        # varies inside the slab: full stream
        # Row-constant parameter: one value per (leading-dims) row, never
        # materialized at full size -> a single tiny (rows, 1) HBM stream.
        a = a.reshape(_norm_shape(a.shape, ndim)[:ndim - s])
        a = jnp.broadcast_to(a, row_shape).reshape(rows, 1)
        if rows_pad != rows:
            a = jnp.pad(a, ((0, rows_pad - rows), (0, 0)),
                        constant_values=pad_value)
        return a, pl.BlockSpec((tile_rows, 1), lambda i: (i, 0))

    x2, x_spec = prep_big(inputs, 0.0)
    sg2, sg_spec = prep_param(sigma, 1.0)
    mu2, mu_spec = prep_param(mu, 0.0)
    out_spec = pl.BlockSpec((tile_rows, l_pad), lambda i: (i, 0))
    grid = (rows_pad // tile_rows,)

    out2 = _pallas_call((x2, sg2, mu2), (x_spec, sg_spec, mu_spec, out_spec),
                        (rows_pad, l_pad), out_dtype, grid)

    if rows_pad != rows or l_pad != l_col:
        out2 = out2[:rows, :l_col]
    return out2.reshape(out_shape)


# ----------------------------------------------------------------------------
# Public wrapper
# ----------------------------------------------------------------------------
@partial(jax.jit, static_argnames=("min_pallas_elements", "tile_bytes"))
def gaussian_model_forward(inputs, hyper_sigma, hyper_mu, *,
                           min_pallas_elements=2048,
                           tile_bytes=2 * 1024 * 1024):
    """Pallas implementation of GaussianModel.forward (elementwise, mem-bound)."""
    out_shape = jnp.broadcast_shapes(inputs.shape, hyper_sigma.shape,
                                     hyper_mu.shape)
    out_dtype = jnp.result_type(inputs.dtype, hyper_sigma.dtype, hyper_mu.dtype)
    ndim = len(out_shape)
    total = int(math.prod(out_shape)) if ndim else 1

    # Tiny problems: per-call Pallas fixed costs dominate; let XLA fuse it.
    if total < min_pallas_elements:
        x = jnp.broadcast_to(inputs, out_shape).astype(jnp.float32)
        sg = jnp.broadcast_to(hyper_sigma, out_shape).astype(jnp.float32)
        mu = jnp.broadcast_to(hyper_mu, out_shape).astype(jnp.float32)
        k = (1.0 / sg) * _INV_SQRT2
        res = 0.5 * (lax.erf((x - mu + 0.5) * k) - lax.erf((x - mu - 0.5) * k))
        return jnp.maximum(res, _LIKELIHOOD_BOUND).astype(out_dtype)

    # Row-broadcast path: sigma/mu constant over a trailing slab of dims.
    t_sig = _trailing_ones(hyper_sigma.shape, ndim)
    t_mu = _trailing_ones(hyper_mu.shape, ndim)
    if t_sig > 0 and t_mu > 0:
        s = min(t_sig, t_mu)
    else:
        s = max(t_sig, t_mu)
    if s > 0:
        l_col = int(math.prod(out_shape[ndim - s:]))
        rows = total // max(l_col, 1)
        l_pad = _round_up(max(l_col, 1), 128)
        # Only worth it if the slab is lane-friendly (low column-pad waste)
        # and an 8-row tile still fits the VMEM budget.
        if 128 <= l_pad <= 65536 and l_pad * 4 <= l_col * 5 and rows >= 1:
            return _forward_row_broadcast(inputs, hyper_sigma, hyper_mu,
                                          out_shape, out_dtype, s,
                                          rows, l_col, l_pad, tile_bytes)

    # Generic flat path (per-element sigma/mu, or awkward broadcast shapes).
    return _forward_flat(inputs, hyper_sigma, hyper_mu, out_shape, out_dtype,
                         total, tile_bytes)


# ----------------------------------------------------------------------------
# Reference + tests
# ----------------------------------------------------------------------------
def _reference(inputs, sigma, mu):
    x = inputs.astype(jnp.float32)
    sg = sigma.astype(jnp.float32)
    m = mu.astype(jnp.float32)
    upper = (x - m + 0.5) / sg
    lower = (x - m - 0.5) / sg
    cdf = lambda t: 0.5 * (1.0 + lax.erf(t * _INV_SQRT2))
    return jnp.maximum(cdf(upper) - cdf(lower), _LIKELIHOOD_BOUND)


if __name__ == "__main__":
    key = jax.random.PRNGKey(0)
    k1, k2, k3 = jax.random.split(key, 3)

    def check(x, sg, mu):
        out = jax.block_until_ready(gaussian_model_forward(x, sg, mu))
        ref = _reference(x, sg, mu)
        assert out.shape == ref.shape, (out.shape, ref.shape)
        assert jnp.allclose(out.astype(jnp.float32), ref, atol=1e-5, rtol=1e-5)
        return out

    # 1) Per-element sigma/mu, NCHW latent (Pallas flat path, single block).
    shape = (2, 4, 16, 16)
    x = jax.random.normal(k1, shape, jnp.float32) * 3.0
    sg = jax.nn.softplus(jax.random.normal(k2, shape, jnp.float32)) + 0.1
    mu = jax.random.normal(k3, shape, jnp.float32)
    check(x, sg, mu)

    # 2) Per-channel sigma/mu (Pallas row-broadcast path: no host broadcast).
    sg_c = jax.nn.softplus(jax.random.normal(k2, (1, 4, 1, 1), jnp.float32)) + 0.1
    mu_c = jax.random.normal(k3, (1, 4, 1, 1), jnp.float32)
    check(x, sg_c, mu_c)

    # 3) Ragged tiny shape (fused jnp fallback path).
    shape3 = (2, 3, 7, 11)
    x3 = jax.random.normal(k1, shape3, jnp.float32) * 2.0
    sg3 = jax.nn.softplus(jax.random.normal(k2, shape3, jnp.float32)) + 0.1
    mu3 = jax.random.normal(k3, shape3, jnp.float32)
    check(x3, sg3, mu3)

    # 4) Larger per-element case: multi-step grid on the flat path.
    shape4 = (4, 16, 128, 128)
    x4 = jax.random.normal(k1, shape4, jnp.float32) * 3.0
    sg4 = jax.nn.softplus(jax.random.normal(k2, shape4, jnp.float32)) + 0.1
    mu4 = jax.random.normal(k3, shape4, jnp.float32)
    check(x4, sg4, mu4)

    # 5) Larger per-channel case: multi-step grid on the row-broadcast path.
    sg5 = jax.nn.softplus(jax.random.normal(k2, (1, 16, 1, 1), jnp.float32)) + 0.1
    mu5 = jax.random.normal(k3, (1, 16, 1, 1), jnp.float32)
    check(x4, sg5, mu5)

    print("KERNEL_OK")
</pallas_src>

<mosaic_0001>
module attributes {stable_mosaic.version = 11 : i64} {
  func.func @_gaussian_kernel(%arg0: i32, %arg1: memref<4x512xf32, #tpu.memory_space<vmem>>, %arg2: memref<4x512xf32, #tpu.memory_space<vmem>>, %arg3: memref<4x512xf32, #tpu.memory_space<vmem>>, %arg4: memref<4x512xf32, #tpu.memory_space<vmem>>) attributes {dimension_semantics = [#tpu.dimension_semantics<parallel>], iteration_bounds = array<i64: 1>, scalar_prefetch = 0 : i64, scratch_operands = 0 : i64, tpu.core_type = #tpu.core_type<tc>, window_params = [{transform_indices = @transform_0, window_bounds = array<i64: 4, 512>}, {transform_indices = @transform_1, window_bounds = array<i64: 4, 512>}, {transform_indices = @transform_2, window_bounds = array<i64: 4, 512>}, {transform_indices = @transform_3, window_bounds = array<i64: 4, 512>}]} {
    %c0 = arith.constant 0 : index
    %c0_0 = arith.constant 0 : index
    %0 = vector.load %arg1[%c0, %c0_0] : memref<4x512xf32, #tpu.memory_space<vmem>>, vector<4x512xf32>
    %c0_1 = arith.constant 0 : index
    %c0_2 = arith.constant 0 : index
    %1 = vector.load %arg2[%c0_1, %c0_2] : memref<4x512xf32, #tpu.memory_space<vmem>>, vector<4x512xf32>
    %c0_3 = arith.constant 0 : index
    %c0_4 = arith.constant 0 : index
    %2 = vector.load %arg3[%c0_3, %c0_4] : memref<4x512xf32, #tpu.memory_space<vmem>>, vector<4x512xf32>
    %3 = tpu.reciprocal %1 : vector<4x512xf32> -> vector<4x512xf32>
    %cst = arith.constant 0.707106769 : f32
    %4 = vector.broadcast %cst : f32 to vector<4x512xf32>
    %5 = arith.mulf %3, %4 : vector<4x512xf32>
    %6 = arith.subf %0, %2 : vector<4x512xf32>
    %cst_5 = arith.constant 5.000000e-01 : f32
    %7 = vector.broadcast %cst_5 : f32 to vector<4x512xf32>
    %8 = arith.addf %6, %7 : vector<4x512xf32>
    %9 = arith.mulf %8, %5 : vector<4x512xf32>
    %cst_6 = arith.constant 5.000000e-01 : f32
    %10 = vector.broadcast %cst_6 : f32 to vector<4x512xf32>
    %11 = arith.subf %6, %10 : vector<4x512xf32>
    %12 = arith.mulf %11, %5 : vector<4x512xf32>
    %13 = math.erf %9 : vector<4x512xf32>
    %14 = math.erf %12 : vector<4x512xf32>
    %15 = arith.subf %13, %14 : vector<4x512xf32>
    %cst_7 = arith.constant 5.000000e-01 : f32
    %16 = vector.broadcast %cst_7 : f32 to vector<4x512xf32>
    %17 = arith.mulf %16, %15 : vector<4x512xf32>
    %cst_8 = arith.constant 9.99999993E-9 : f32
    %18 = vector.broadcast %cst_8 : f32 to vector<4x512xf32>
    %19 = arith.maximumf %17, %18 : vector<4x512xf32>
    %c0_9 = arith.constant 0 : index
    %c0_10 = arith.constant 0 : index
    %20 = vector.load %arg4[%c0_9, %c0_10] : memref<4x512xf32, #tpu.memory_space<vmem>>, vector<4x512xf32>
    tpu.vector_store %arg4[%c0_9, %c0_10], %19 {strides = array<i32>} : memref<4x512xf32, #tpu.memory_space<vmem>>, vector<4x512xf32>,
    return
  }
  func.func @transform_0(%arg0: i32) -> (i32, i32) {
    %c0_i32 = arith.constant 0 : i32
    %c0_i32_0 = arith.constant 0 : i32
    return %arg0, %c0_i32 : i32, i32
  }
  func.func @transform_1(%arg0: i32) -> (i32, i32) {
    %c0_i32 = arith.constant 0 : i32
    %c0_i32_0 = arith.constant 0 : i32
    return %arg0, %c0_i32 : i32, i32
  }
  func.func @transform_2(%arg0: i32) -> (i32, i32) {
    %c0_i32 = arith.constant 0 : i32
    %c0_i32_0 = arith.constant 0 : i32
    return %arg0, %c0_i32 : i32, i32
  }
  func.func @transform_3(%arg0: i32) -> (i32, i32) {
    %c0_i32 = arith.constant 0 : i32
    %c0_i32_0 = arith.constant 0 : i32
    return %arg0, %c0_i32 : i32, i32
  }
}

</mosaic_0001>

<bundles_post_ra>
// kernel: gaussian_model_forward.1
= control target key start
LH: loop header
LB: loop body
LE: loop exit
PB: predicated region body
PF: predicated region fallthrough
CT: control target
= control target key end

     0   :  { %s108_s1 = inlined_call_operand.vmem [shape: f32[4,512], index: 1, kind: input, shape index: {}]   ;;  %s109_s0 = inlined_call_operand.vmem [shape: f32[4,512], index: 0, kind: input, shape index: {}]   ;;  %s110_s2 = inlined_call_operand.vmem [shape: f32[4,512], index: 2, kind: input, shape index: {}]   ;;  %s111_s3 = inlined_call_operand.vmem [shape: f32[4,512], index: 3, kind: output, shape index: {}]  }
   0x1   :  { %v16_v0 = vld [vmem:[%s108_s1] sm:$0xff]  ;;  %v17_v1 = vld [vmem:[%s108_s1 + $0x8] sm:$0xff] }
   0x2   :  { %52 = vrcp.f32 %v16_v0  ;;  %v14_v2 = vld [vmem:[%s109_s0] sm:$0xff]  ;;  %v15_v4 = vld [vmem:[%s109_s0 + $0x8] sm:$0xff] }
   0x3   :  { %54 = vrcp.f32 %v17_v1  ;;  %v18_v3 = vld [vmem:[%s110_s2] sm:$0xff]  ;;  %v19_v5 = vld [vmem:[%s110_s2 + $0x8] sm:$0xff] }
   0x4   :  { %v24_v6 = vsub.f32 %v14_v2, %v18_v3  ;;  %v25_v7 = vsub.f32 %v15_v4, %v19_v5 }
   0x6   :  { %v26_v8 = vadd.f32 0.5, %v24_v6  ;;  %v50_v9 = vadd.f32 -0.5, %v24_v6  ;;  %v27_v11 = vadd.f32 0.5, %v25_v7  ;;  %v51_v12 = vadd.f32 -0.5, %v25_v7 }
   0xc   :  { %v53_v10 = vpop.eup %52 }
   0xd   :  { %v55_v13 = vpop.eup %54  ;;  %v22_v14 = vmul.f32 0.70710677, %v53_v10 }
   0xe   :  { %v23_v15 = vmul.f32 0.70710677, %v55_v13 }
   0xf   :  { %v28_v16 = vmul.f32 %v26_v8, %v22_v14  ;;  %v32_v17 = vmul.f32 %v50_v9, %v22_v14 }
  0x10   :  { %v29_v18 = vmul.f32 %v27_v11, %v23_v15  ;;  %v33_v19 = vmul.f32 %v51_v12, %v23_v15 }
  0x11   :  { %56 = verf.f32 %v28_v16 }
  0x12   :  { %58 = verf.f32 %v32_v17 }
  0x13   :  { %60 = verf.f32 %v29_v18 }
  0x14   :  { %62 = verf.f32 %v33_v19 }
  0x1b   :  { %v57_v20 = vpop.eup %56 }
  0x1c   :  { %v59_v21 = vpop.eup %58 }
  0x1d   :  { %v61_v22 = vpop.eup %60  ;;  %v38_v23 = vsub.f32 %v57_v20, %v59_v21 }
  0x1e   :  { %v63_v24 = vpop.eup %62 }
  0x1f   :  { %v40_v25 = vmul.f32 0.5, %v38_v23  ;;  %v39_v26 = vsub.f32 %v61_v22, %v63_v24 }
  0x21   :  { %v42_v27 = vmax.f32 %v40_v25, 1e-08  ;;  %v41_v28 = vmul.f32 0.5, %v39_v26 }
  0x23   :  { %44 = vst [vmem:[%s111_s3] sm:$0xff] %v42_v27  ;;  %v43_v29 = vmax.f32 %v41_v28, 1e-08 }
  0x25   :  { %45 = vst [vmem:[%s111_s3 + $0x8] sm:$0xff] %v43_v29 }

</bundles_post_ra>
